<compile_context>
chip_gen: v5e
topology: v5e:2x2
jax: 0.10.0
libtpu: 0.0.40
codegen_flags: <defaults>
</compile_context>

<pallas_src>
import functools

import jax
import jax.numpy as jnp
from jax import lax
from jax.experimental import pallas as pl
from jax.experimental.pallas import tpu as pltpu


def _pick_cols(total_elems: int, dim: int) -> int:
    """Lane-dense column count that exactly divides total_elems (no padding)."""
    for c in (2048, 1024, 512, 256, 128):
        if total_elems % c == 0:
            return c
    return dim  # fall back to the natural feature dim (full-dim block is legal)


def _pick_row_block(n_rows: int, n_cols: int, itemsize: int,
                    target_bytes: int) -> int:
    """Largest row block (<= target_bytes per input block) obeying TPU tiling."""
    rb = max(1, target_bytes // (n_cols * itemsize))
    if rb >= n_rows:
        return n_rows                    # full array in one block (always legal)
    return max(8, (rb // 8) * 8)         # keep sublane (8) alignment otherwise


def _make_kernel(loss_type: str, n_rows: int, row_block: int, n_k: int,
                 needs_mask: bool):
    """Kernel accumulating the unnormalized partial sum for one partition."""

    def kernel(g_ref, t_ref, out_ref, acc_ref):
        k = pl.program_id(1)

        @pl.when(k == 0)
        def _init():
            acc_ref[...] = jnp.zeros_like(acc_ref)

        g = g_ref[...].astype(jnp.float32)
        t = t_ref[...].astype(jnp.float32)

        if needs_mask:
            p = pl.program_id(0)
            blk = p * n_k + k  # un-clamped logical block index
            row_ids = blk * row_block + lax.broadcasted_iota(
                jnp.int32, (row_block, 1), 0)
            valid = row_ids < n_rows                       # (row_block, 1) bool

        if loss_type in ("l2", "l1"):
            d = g - t
            contrib = d * d if loss_type == "l2" else jnp.abs(d)   # (rb, C)
            if needs_mask:
                contrib = jnp.where(valid, contrib, 0.0)
            acc_ref[...] += contrib                                 # pure VPU
        elif loss_type == "cos":
            dot = jnp.sum(g * t, axis=-1, keepdims=True)            # (rb, 1)
            gg = jnp.sum(g * g, axis=-1, keepdims=True)
            tt = jnp.sum(t * t, axis=-1, keepdims=True)
            # torch: dot / max(||g||*||t||, 1e-8) == dot * rsqrt(max(gg*tt, 1e-16))
            cosv = dot * lax.rsqrt(jnp.maximum(gg * tt, 1e-16))
            loss = 1.0 - cosv
            if needs_mask:
                loss = jnp.where(valid, loss, 0.0)
            acc_ref[...] += loss
        elif loss_type == "euc":
            d = g - t
            loss = jnp.sqrt(jnp.sum(d * d, axis=-1, keepdims=True))  # (rb, 1)
            if needs_mask:
                loss = jnp.where(valid, loss, 0.0)
            acc_ref[...] += loss
        else:
            raise NotImplementedError(loss_type)

        @pl.when(k == n_k - 1)
        def _finalize():
            # Single cross-lane/sublane reduce per partition.
            out_ref[...] = jnp.sum(acc_ref[...]).reshape(1, 1, 1)

    return kernel


@functools.partial(
    jax.jit,
    static_argnames=("loss_type", "num_partitions", "target_block_bytes"))
def prompt_similarity(generated_prompt, target_prompt, loss_type="l2",
                      num_partitions=2, target_block_bytes=1 << 20):
    """Pallas implementation of PromptSimilarity.forward."""
    dim = generated_prompt.shape[-1]
    total = generated_prompt.size
    itemsize = generated_prompt.dtype.itemsize  # keep caller dtype (bf16 stays bf16)

    if loss_type in ("l2", "l1"):
        cols = _pick_cols(total, dim)           # lane-dense elementwise layout
    elif loss_type in ("cos", "euc"):
        cols = dim                              # per-row reduce needs row layout
    else:
        raise NotImplementedError(loss_type)
    rows = total // cols
    g2 = generated_prompt.reshape(rows, cols)   # reshape only: no HBM copy
    t2 = target_prompt.reshape(rows, cols)

    row_block = _pick_row_block(rows, cols, itemsize, target_block_bytes)
    n_blocks = pl.cdiv(rows, row_block)
    n_par = max(1, min(num_partitions, n_blocks))   # 2-way split for v7x megacore
    n_k = pl.cdiv(n_blocks, n_par)
    needs_mask = (n_par * n_k * row_block) != rows

    kernel = _make_kernel(loss_type, rows, row_block, n_k, needs_mask)

    if loss_type in ("l2", "l1"):
        acc_shape = (row_block, cols)           # elementwise accumulation
    else:
        acc_shape = (row_block, 1)              # per-row accumulation

    def in_index_map(p, k):
        # Clamp so a (masked-out) trailing block never issues an OOB-start DMA.
        return (jnp.minimum(p * n_k + k, n_blocks - 1), 0)

    flops_per_elem = {"l2": 3, "l1": 2, "cos": 8, "euc": 4}[loss_type]
    cost = pl.CostEstimate(
        flops=flops_per_elem * rows * cols,
        transcendentals=0 if loss_type in ("l1", "l2") else rows,
        bytes_accessed=2 * rows * cols * itemsize + n_par * 4,
    )

    partials = pl.pallas_call(
        kernel,
        out_shape=jax.ShapeDtypeStruct((n_par, 1, 1), jnp.float32),
        grid_spec=pltpu.PrefetchScalarGridSpec(
            num_scalar_prefetch=0,
            grid=(n_par, n_k),
            in_specs=[
                pl.BlockSpec((row_block, cols), in_index_map),
                pl.BlockSpec((row_block, cols), in_index_map),
            ],
            out_specs=pl.BlockSpec((1, 1, 1), lambda p, k: (p, 0, 0)),
            scratch_shapes=[pltpu.VMEM(acc_shape, jnp.float32)],
        ),
        compiler_params=pltpu.CompilerParams(
            dimension_semantics=("parallel", "arbitrary"),
            vmem_limit_bytes=32 * 1024 * 1024,
        ),
        cost_estimate=cost,
    )(g2, t2)

    total_sum = jnp.sum(partials)

    if loss_type in ("l2", "l1"):
        return total_sum / jnp.float32(total)        # mean over all elements
    else:                                            # "cos", "euc": mean over rows
        return total_sum / jnp.float32(rows)


# Pure-JAX reference (mirrors the PyTorch semantics) for verification.
def _reference(g, t, loss_type):
    dim = g.shape[-1]
    g = g.reshape(-1, dim).astype(jnp.float32)
    t = t.reshape(-1, dim).astype(jnp.float32)
    if loss_type == "l2":
        return jnp.mean((g - t) ** 2)
    if loss_type == "l1":
        return jnp.mean(jnp.abs(g - t))
    if loss_type == "cos":
        dot = jnp.sum(g * t, axis=-1)
        denom = jnp.maximum(
            jnp.linalg.norm(g, axis=-1) * jnp.linalg.norm(t, axis=-1), 1e-8)
        return jnp.mean(1.0 - dot / denom)
    if loss_type == "euc":
        return jnp.mean(jnp.sqrt(jnp.sum((g - t) ** 2, axis=-1)))
    raise NotImplementedError(loss_type)


if __name__ == "__main__":
    key = jax.random.PRNGKey(0)

    ok = True
    test_cases = [
        # (shape, extra kwargs)
        ((2, 8, 32), {}),                                  # single-block fast path
        ((2, 33, 96), {"target_block_bytes": 4096}),       # multi-block + ragged rows
                                                           # + masked tail + 2-way split
    ]
    for shape, kwargs in test_cases:
        key, kg, kt = jax.random.split(key, 3)
        gen = jax.random.normal(kg, shape, dtype=jnp.float32)
        tgt = jax.random.normal(kt, shape, dtype=jnp.float32)
        for loss_type in ("l2", "cos", "l1", "euc"):
            out = prompt_similarity(gen, tgt, loss_type=loss_type, **kwargs)
            out = jax.block_until_ready(out)
            ref = _reference(gen, tgt, loss_type)
            if not jnp.allclose(out, ref, rtol=1e-4, atol=1e-5):
                ok = False
                print(f"MISMATCH shape={shape} type={loss_type}: "
                      f"pallas={out} ref={ref}")

    if ok:
        print("KERNEL_OK")
</pallas_src>

<mosaic_0001>
module attributes {stable_mosaic.version = 11 : i64} {
  func.func @kernel(%arg0: i32, %arg1: i32, %arg2: memref<1x512xf32, #tpu.memory_space<vmem>>, %arg3: memref<1x512xf32, #tpu.memory_space<vmem>>, %arg4: memref<1x1x1xf32, #tpu.memory_space<vmem>>, %arg5: memref<1x512xf32, #tpu.memory_space<vmem>>) attributes {dimension_semantics = [#tpu.dimension_semantics<parallel>, #tpu.dimension_semantics<arbitrary>], iteration_bounds = array<i64: 1, 1>, scalar_prefetch = 0 : i64, scratch_operands = 1 : i64, tpu.core_type = #tpu.core_type<tc>, window_params = [{transform_indices = @transform_0, window_bounds = array<i64: 1, 512>}, {transform_indices = @transform_1, window_bounds = array<i64: 1, 512>}, {transform_indices = @transform_2, window_bounds = array<i64: 1, 1, 1>}]} {
    %c0_i32 = arith.constant 0 : i32
    %0 = arith.cmpi eq, %arg1, %c0_i32 : i32
    %1 = arith.extui %0 : i1 to i32
    %c0_i32_0 = arith.constant 0 : i32
    %2 = arith.cmpi ne, %1, %c0_i32_0 : i32
    scf.if %2 {
      %cst = arith.constant 0.000000e+00 : f32
      %13 = vector.broadcast %cst : f32 to vector<1x512xf32>
      %c0_10 = arith.constant 0 : index
      %c0_11 = arith.constant 0 : index
      %14 = vector.load %arg5[%c0_10, %c0_11] : memref<1x512xf32, #tpu.memory_space<vmem>>, vector<1x512xf32>
      tpu.vector_store %arg5[%c0_10, %c0_11], %13 {strides = array<i32>} : memref<1x512xf32, #tpu.memory_space<vmem>>, vector<1x512xf32>,
    } else {
    }
    %c0 = arith.constant 0 : index
    %c0_1 = arith.constant 0 : index
    %3 = vector.load %arg2[%c0, %c0_1] : memref<1x512xf32, #tpu.memory_space<vmem>>, vector<1x512xf32>
    %c0_2 = arith.constant 0 : index
    %c0_3 = arith.constant 0 : index
    %4 = vector.load %arg3[%c0_2, %c0_3] : memref<1x512xf32, #tpu.memory_space<vmem>>, vector<1x512xf32>
    %5 = arith.subf %3, %4 : vector<1x512xf32>
    %6 = arith.mulf %5, %5 : vector<1x512xf32>
    %c0_4 = arith.constant 0 : index
    %c0_5 = arith.constant 0 : index
    %7 = vector.load %arg5[%c0_4, %c0_5] : memref<1x512xf32, #tpu.memory_space<vmem>>, vector<1x512xf32>
    %8 = arith.addf %7, %6 : vector<1x512xf32>
    %c0_6 = arith.constant 0 : index
    %c0_7 = arith.constant 0 : index
    %9 = vector.load %arg5[%c0_6, %c0_7] : memref<1x512xf32, #tpu.memory_space<vmem>>, vector<1x512xf32>
    tpu.vector_store %arg5[%c0_6, %c0_7], %8 {strides = array<i32>} : memref<1x512xf32, #tpu.memory_space<vmem>>, vector<1x512xf32>,
    %c0_i32_8 = arith.constant 0 : i32
    %10 = arith.cmpi eq, %arg1, %c0_i32_8 : i32
    %11 = arith.extui %10 : i1 to i32
    %c0_i32_9 = arith.constant 0 : i32
    %12 = arith.cmpi ne, %11, %c0_i32_9 : i32
    scf.if %12 {
      %c0_10 = arith.constant 0 : index
      %c0_11 = arith.constant 0 : index
      %13 = vector.load %arg5[%c0_10, %c0_11] : memref<1x512xf32, #tpu.memory_space<vmem>>, vector<1x512xf32>
      %14 = vector.shape_cast %13 : vector<1x512xf32> to vector<1x1x512xf32>
      %cst = arith.constant dense<0.000000e+00> : vector<1xf32>
      %15 = vector.multi_reduction <add>, %14, %cst [1, 2] : vector<1x1x512xf32> to vector<1xf32>
      %16 = vector.shape_cast %15 : vector<1xf32> to vector<1x1x1xf32>
      %17 = vector.extract %16[0, 0, 0] : f32 from vector<1x1x1xf32>
      %18 = vector.broadcast %17 : f32 to vector<1x1x1xf32>
      %c0_12 = arith.constant 0 : index
      %c0_13 = arith.constant 0 : index
      %c0_14 = arith.constant 0 : index
      %19 = vector.load %arg4[%c0_12, %c0_13, %c0_14] : memref<1x1x1xf32, #tpu.memory_space<vmem>>, vector<1x1x1xf32>
      tpu.vector_store %arg4[%c0_12, %c0_13, %c0_14], %18 {strides = array<i32>} : memref<1x1x1xf32, #tpu.memory_space<vmem>>, vector<1x1x1xf32>,
    } else {
    }
    return
  }
  func.func @transform_0(%arg0: i32, %arg1: i32) -> (i32, i32) {
    %c1_i32 = arith.constant 1 : i32
    %0 = arith.muli %arg0, %c1_i32 : i32
    %1 = arith.addi %0, %arg1 : i32
    %c0_i32 = arith.constant 0 : i32
    %2 = arith.minsi %1, %c0_i32 : i32
    %c0_i32_0 = arith.constant 0 : i32
    %c0_i32_1 = arith.constant 0 : i32
    return %2, %c0_i32_0 : i32, i32
  }
  func.func @transform_1(%arg0: i32, %arg1: i32) -> (i32, i32) {
    %c1_i32 = arith.constant 1 : i32
    %0 = arith.muli %arg0, %c1_i32 : i32
    %1 = arith.addi %0, %arg1 : i32
    %c0_i32 = arith.constant 0 : i32
    %2 = arith.minsi %1, %c0_i32 : i32
    %c0_i32_0 = arith.constant 0 : i32
    %c0_i32_1 = arith.constant 0 : i32
    return %2, %c0_i32_0 : i32, i32
  }
  func.func @transform_2(%arg0: i32, %arg1: i32) -> (i32, i32, i32) {
    %c0_i32 = arith.constant 0 : i32
    %c0_i32_0 = arith.constant 0 : i32
    %c0_i32_1 = arith.constant 0 : i32
    return %arg0, %c0_i32, %c0_i32_0 : i32, i32, i32
  }
}

</mosaic_0001>

<bundles_post_ra>
// kernel: prompt_similarity.1
= control target key start
LH: loop header
LB: loop body
LE: loop exit
PB: predicated region body
PF: predicated region fallthrough
CT: control target
= control target key end

     0   :  { %v70_v0 = vlaneseq  ;;  %s203_s0 = inlined_call_operand.vmem [shape: f32[1,512], index: 0, kind: input, shape index: {}]   ;;  %s204_s1 = inlined_call_operand.vmem [shape: f32[1,512], index: 1, kind: input, shape index: {}]   ;;  %s205_s2 = inlined_call_operand.hbm [shape: f32[1,1,1], index: 2, kind: output, shape index: {}]  }
   0x1   :  { %v75_v1 = vld [vmem:[%s203_s0] sm:$0xf] }
   0x2   :  { %v76_v2 = vld [vmem:[%s204_s1] sm:$0xf] }
   0x3   :  { %7 = vsyncpa [#allocation4], 0  ;;  %vm72_vm0 = vcmp.lt.s32.totalorder %v70_v0, 512  ;;  %v177_v3 = vmov 0.0   ;;  %v77_v4 = vsub.f32 %v75_v1, %v76_v2  ;;  %vm99_vm1 = vcmask 1040384   ;;  %s178_s0 = smov [#allocation3]  }
   0x4   :  { %74 = vst.msk [vmem:[#allocation2] sm:$0xf] %vm72_vm0, %v177_v3  ;;  %s124_s1 = sshll.u32 %s178_s0, 4  ;;  %s126_s15 = sshll.u32 %s205_s2, 4  ;;  %vm117_vm2 = vcmask 0   ;;  %s125_s1 = int_to_ptr.vmem [resolvable:$true] %s124_s1  ;;  %s127_s15 = int_to_ptr.hbm [resolvable:$true] %s126_s15 }
   0x5   :  { %v78_v5 = vmul.f32 %v77_v4, %v77_v4 }
   0xb   :  { %v79_v6 = vld [vmem:[#allocation2] sm:$0xf] }
   0xc   :  { %v80_v7 = vadd.f32 %v79_v6, %v78_v5 }
   0xe   :  { %85 = vst.msk [vmem:[#allocation2] sm:$0xf] %vm72_vm0, %v80_v7 }
  0x15   :  { %v89_v8 = vld [vmem:[#allocation2] sm:$0xf] }
  0x16   :  { %v91_v9 = vperm.slane %v89_v8, 0  ;;  %v92_v10 = vperm.slane %v89_v8, 1  ;;  %v93_v11 = vperm.slane %v89_v8, 2  ;;  %v94_v12 = vperm.slane %v89_v8, 3 }
  0x18   :  { %v100_v13 = vsel %vm99_vm1, %v91_v9, 0.0  ;;  %v101_v14 = vsel %vm99_vm1, %v92_v10, 0.0  ;;  %v103_v15 = vsel %vm99_vm1, %v93_v11, 0.0  ;;  %v105_v17 = vsel %vm99_vm1, %v94_v12, 0.0 }
  0x19   :  { %v102_v16 = vadd.f32 %v101_v14, %v100_v13 }
  0x1b   :  { %v104_v18 = vadd.f32 %v103_v15, %v102_v16 }
  0x1d   :  { %v106_v19 = vadd.f32 %v105_v17, %v104_v18 }
  0x1f   :  { %107 = vadd.xlane.f32.xlu0 %v106_v19 }
  0x92   :  { %v108_v20 = vpop.xlane.xlu0 %107 }
  0x93   :  { %v109_v21 = vrot.slane %v108_v20, 4 }
  0x95   :  { %v110_v22 = vadd.f32 %v109_v21, %v108_v20 }
  0x97   :  { %v111_v23 = vrot.slane %v110_v22, 2 }
  0x99   :  { %v112_v24 = vadd.f32 %v111_v23, %v110_v22 }
  0x9b   :  { %v113_v25 = vrot.slane %v112_v24, 1 }
  0x9d   :  { %v114_v26 = vadd.f32 %v113_v25, %v112_v24 }
  0x9f   :  { %147 = vpush %v114_v26 }
  0xd0   :  { %s148_s16 = spop %147 }
  0xd1   :  { %v116_v27 = vstv %s148_s16 }
  0xd2   :  { %118 = vst.msk [vmem:[#allocation3] sm:$0x1] %vm117_vm2, %v116_v27 }
  0xd3   :  { %129 = dma.vmem_to_hbm [thread:$0]  %s125_s1, 16, %s127_s15, [#allocation4]  }
  0xd4   :  { %175 = dma.done.wait [#allocation4], 16  }
  0xd5   :  { %176 = vsyncadd [#allocation4], 4294967280 }
  0xd6   :  { %134 = vsyncpa [#allocation4], 1 }

</bundles_post_ra>
